<compile_context>
chip_gen: v7x
topology: tpu7x:2x2x1
jax: 0.10.0
libtpu: 0.0.40
codegen_flags: <defaults>
</compile_context>

<pallas_src>
import functools
import math

import jax
import jax.numpy as jnp
from jax import lax
from jax.experimental import pallas as pl
from jax.experimental.pallas import tpu as pltpu


# ----------------------------- helpers -----------------------------

def _round_up(x, m):
    return (x + m - 1) // m * m


def _tiles(dim, max_tile, align):
    """Return (padded_dim, tile) with tile | padded_dim.

    If dim <= max_tile the single block covers the full dimension (no padding — a block equal
    to the full array dim satisfies the (8,128) rule).  Otherwise pick the power-of-two tile
    <= max_tile (>= align, align>=16 for sublane dims so bf16 tiles stay legal) minimizing
    padding."""
    if dim <= max_tile:
        return dim, dim
    best = None
    t = max_tile
    while t >= align:
        p = _round_up(dim, t)
        if best is None or p < best[0]:
            best = (p, t)
        t //= 2
    return best


def _pad2d(x, rows, cols):
    r, c = x.shape
    if (r, c) == (rows, cols):
        return x
    return jnp.zeros((rows, cols), x.dtype).at[:r, :c].set(x)


# ----------------------------- kernel 1: fused Q/K/V projection -----------------------------

def _qkv_proj_kernel(x_ref, w_ref, b_ref, o_ref, acc_ref):
    kk = pl.program_id(3)

    @pl.when(kk == 0)
    def _():
        acc_ref[...] = jnp.zeros_like(acc_ref)

    acc_ref[...] += jnp.dot(x_ref[0], w_ref[0], preferred_element_type=jnp.float32)

    @pl.when(kk == pl.num_programs(3) - 1)
    def _():
        o_ref[0] = (acc_ref[...] + b_ref[0]).astype(o_ref.dtype)


def pallas_qkv_proj(q2d, k2d, v2d, wq, bq, wk, bk, wv, bv,
                    *, tm_max=256, tn_max=256, tk_max=1024):
    """Fused projections: one pallas_call computes q@Wq+bq, k@Wk+bk, v@Wv+bv.

    Returns (3, Mp, Np) bf16 (plane 0 = q-proj, 1 = k-proj, 2 = v-proj)."""
    Mq, Dm = q2d.shape
    Mk = k2d.shape[0]
    Mv = v2d.shape[0]
    Nq = wq.shape[1]
    Nv = wv.shape[1]
    M = max(Mq, Mk, Mv)
    N = max(Nq, Nv)

    Mp, tm = _tiles(M, tm_max, 16)
    Np, tn = _tiles(N, tn_max, 128)
    Kp, tk = _tiles(Dm, tk_max, 128)

    xs = jnp.stack([_pad2d(q2d, Mp, Kp), _pad2d(k2d, Mp, Kp),
                    _pad2d(v2d, Mp, Kp)]).astype(jnp.bfloat16)
    ws = jnp.stack([_pad2d(wq, Kp, Np), _pad2d(wk, Kp, Np),
                    _pad2d(wv, Kp, Np)]).astype(jnp.bfloat16)
    bs = jnp.stack([_pad2d(bq.reshape(1, -1), 1, Np),
                    _pad2d(bk.reshape(1, -1), 1, Np),
                    _pad2d(bv.reshape(1, -1), 1, Np)]).astype(jnp.float32)

    out = pl.pallas_call(
        _qkv_proj_kernel,
        out_shape=jax.ShapeDtypeStruct((3, Mp, Np), jnp.bfloat16),
        grid_spec=pltpu.PrefetchScalarGridSpec(
            num_scalar_prefetch=0,
            grid=(3, Mp // tm, Np // tn, Kp // tk),
            in_specs=[
                pl.BlockSpec((1, tm, tk), lambda p, m, n, k: (p, m, k)),
                pl.BlockSpec((1, tk, tn), lambda p, m, n, k: (p, k, n)),
                pl.BlockSpec((1, 1, tn), lambda p, m, n, k: (p, 0, n)),
            ],
            out_specs=pl.BlockSpec((1, tm, tn), lambda p, m, n, k: (p, m, n)),
            scratch_shapes=[pltpu.VMEM((tm, tn), jnp.float32)],
        ),
        compiler_params=pltpu.CompilerParams(
            dimension_semantics=("parallel", "parallel", "parallel", "arbitrary")),
    )(xs, ws, bs)
    return out


# ----------------------------- kernel 2: head-batched attention -----------------------------

def _attention_kernel(q_ref, k_ref, v_ref, o_ref, attn_ref, *, scale, n_head, d_k, d_v):
    q = q_ref[0]              # (Lq, H*Dk) bf16
    k = k_ref[0]              # (Lk, H*Dk) bf16
    v = v_ref[0]              # (Lk, H*Dv) bf16
    outs = []
    for h in range(n_head):                              # static unrolled head loop
        qh = q[:, h * d_k:(h + 1) * d_k]
        kh = k[:, h * d_k:(h + 1) * d_k]
        vh = v[:, h * d_v:(h + 1) * d_v]
        # scores (Lq, Lk), f32 accumulation on the MXU, scaled by 1/temperature
        s = lax.dot_general(qh, kh, (((1,), (1,)), ((), ())),
                            preferred_element_type=jnp.float32) * scale
        m = jnp.max(s, axis=-1, keepdims=True)
        e = jnp.exp(s - m)
        denom = jnp.sum(e, axis=-1, keepdims=True)
        p = e * pl.reciprocal(denom, approx=True)         # EUP slot, frees VALU
        attn_ref[h, 0] = p
        outs.append(jnp.dot(p.astype(v.dtype), vh, preferred_element_type=jnp.float32))
    # merged, lane-dense (Lq, H*Dv) store -> no wrapper transpose needed
    o_ref[0] = jnp.concatenate(outs, axis=-1).astype(o_ref.dtype)


def pallas_attention(q_p, k_p, v_p, *, scale, n_head, d_k, d_v):
    """q_p:(B,Lq,H*Dk) k_p:(B,Lk,H*Dk) v_p:(B,Lk,H*Dv) bf16 ->
       (out:(B,Lq,H*Dv) bf16 merged layout, attn:(H,B,Lq,Lk) f32)."""
    B, Lq, Nq = q_p.shape
    _, Lk, _ = k_p.shape
    Nv = v_p.shape[-1]
    out, attn = pl.pallas_call(
        functools.partial(_attention_kernel, scale=scale, n_head=n_head, d_k=d_k, d_v=d_v),
        out_shape=(jax.ShapeDtypeStruct((B, Lq, Nv), jnp.bfloat16),
                   jax.ShapeDtypeStruct((n_head, B, Lq, Lk), jnp.float32)),
        grid_spec=pltpu.PrefetchScalarGridSpec(
            num_scalar_prefetch=0,
            grid=(B,),
            in_specs=[
                pl.BlockSpec((1, Lq, Nq), lambda b: (b, 0, 0)),
                pl.BlockSpec((1, Lk, Nq), lambda b: (b, 0, 0)),
                pl.BlockSpec((1, Lk, Nv), lambda b: (b, 0, 0)),
            ],
            out_specs=(pl.BlockSpec((1, Lq, Nv), lambda b: (b, 0, 0)),
                       pl.BlockSpec((n_head, 1, Lq, Lk), lambda b: (0, b, 0, 0))),
        ),
        compiler_params=pltpu.CompilerParams(dimension_semantics=("parallel",)),
    )(q_p, k_p, v_p)
    return out, attn


# ----------------------------- kernel 3: fc + residual add + LayerNorm -----------------------------

def _fc_ln_kernel(a_ref, w_ref, b_ref, r_ref, g_ref, bt_ref, o_ref, acc_ref, *, eps):
    kk = pl.program_id(1)

    @pl.when(kk == 0)
    def _():
        acc_ref[...] = jnp.zeros_like(acc_ref)

    acc_ref[...] += jnp.dot(a_ref[...].astype(jnp.bfloat16),
                            w_ref[...].astype(jnp.bfloat16),
                            preferred_element_type=jnp.float32)

    @pl.when(kk == pl.num_programs(1) - 1)
    def _():
        y = acc_ref[...] + b_ref[...] + r_ref[...]
        mean = jnp.mean(y, axis=-1, keepdims=True)
        c = y - mean
        var = jnp.mean(c * c, axis=-1, keepdims=True)
        o_ref[...] = c * lax.rsqrt(var + eps) * g_ref[...] + bt_ref[...]


def pallas_fc_add_layernorm(a, w, b, residual, gamma, beta,
                            *, eps=1e-5, tm_max=256, tk_max=1024):
    """(a:[M,K] bf16 @ w:[K,Dm] + b) + residual -> LayerNorm, f32 [M,Dm].
    The N block covers the full Dm so the LN epilogue reduces over real features only."""
    M, K = a.shape
    Dm = w.shape[1]
    Mp, tm = _tiles(M, tm_max, 16)
    Kp, tk = _tiles(K, tk_max, 128)

    a_p = _pad2d(a, Mp, Kp)
    w_p = _pad2d(w.astype(jnp.float32), Kp, Dm)
    r_p = _pad2d(residual.astype(jnp.float32), Mp, Dm)

    out = pl.pallas_call(
        functools.partial(_fc_ln_kernel, eps=eps),
        out_shape=jax.ShapeDtypeStruct((Mp, Dm), jnp.float32),
        grid_spec=pltpu.PrefetchScalarGridSpec(
            num_scalar_prefetch=0,
            grid=(Mp // tm, Kp // tk),
            in_specs=[
                pl.BlockSpec((tm, tk), lambda m, kk: (m, kk)),
                pl.BlockSpec((tk, Dm), lambda m, kk: (kk, 0)),
                pl.BlockSpec((1, Dm), lambda m, kk: (0, 0)),
                pl.BlockSpec((tm, Dm), lambda m, kk: (m, 0)),
                pl.BlockSpec((1, Dm), lambda m, kk: (0, 0)),
                pl.BlockSpec((1, Dm), lambda m, kk: (0, 0)),
            ],
            out_specs=pl.BlockSpec((tm, Dm), lambda m, kk: (m, 0)),
            scratch_shapes=[pltpu.VMEM((tm, Dm), jnp.float32)],
        ),
        compiler_params=pltpu.CompilerParams(
            dimension_semantics=("parallel", "arbitrary")),
    )(a_p, w_p, b.reshape(1, Dm).astype(jnp.float32), r_p,
      gamma.reshape(1, Dm).astype(jnp.float32), beta.reshape(1, Dm).astype(jnp.float32))
    if Mp != M:
        out = out[:M]
    return out


# ----------------------------- parameters -----------------------------

def build_params(key, n_head, d_model, d_k, d_v):
    ks = jax.random.split(key, 4)
    std_qk = math.sqrt(2.0 / (d_model + d_k))
    std_v = math.sqrt(2.0 / (d_model + d_v))
    std_fc = math.sqrt(2.0 / (n_head * d_v + d_model))  # xavier_normal_
    # weights stored as (in, out) so Linears are plain x @ W.
    # TODO(synk): PyTorch's default uniform Linear-bias init not replicated; zero biases used deterministically.
    return {
        'n_head': n_head, 'd_k': d_k, 'd_v': d_v,
        'w_qs': std_qk * jax.random.normal(ks[0], (d_model, n_head * d_k), jnp.float32),
        'b_qs': jnp.zeros((n_head * d_k,), jnp.float32),
        'w_ks': std_qk * jax.random.normal(ks[1], (d_model, n_head * d_k), jnp.float32),
        'b_ks': jnp.zeros((n_head * d_k,), jnp.float32),
        'w_vs': std_v * jax.random.normal(ks[2], (d_model, n_head * d_v), jnp.float32),
        'b_vs': jnp.zeros((n_head * d_v,), jnp.float32),
        'w_fc': std_fc * jax.random.normal(ks[3], (n_head * d_v, d_model), jnp.float32),
        'b_fc': jnp.zeros((d_model,), jnp.float32),
        'ln_gamma': jnp.ones((d_model,), jnp.float32),
        'ln_beta': jnp.zeros((d_model,), jnp.float32),
    }


# ----------------------------- forward pass -----------------------------

def multi_head_attention_forward(q, k, v, params, mask=None):
    n_head, d_k, d_v = params['n_head'], params['d_k'], params['d_v']
    B, Lq, Dm = q.shape
    _, Lk, _ = k.shape
    _, Lv, _ = v.shape
    residual = q

    # TODO(synk): mask support (masked_fill(-1e9) before softmax) not implemented; mask must be None.
    assert mask is None

    # 1) fused Q/K/V projection (single launch), bf16 outputs
    qkv = pallas_qkv_proj(q.reshape(B * Lq, Dm), k.reshape(B * Lk, Dm), v.reshape(B * Lv, Dm),
                          params['w_qs'], params['b_qs'],
                          params['w_ks'], params['b_ks'],
                          params['w_vs'], params['b_vs'])
    Nq = n_head * d_k
    Nv = n_head * d_v
    # reshape-only views (no transposes): heads stay packed along the lane dim
    q_p = qkv[0, :B * Lq, :Nq].reshape(B, Lq, Nq)
    k_p = qkv[1, :B * Lk, :Nq].reshape(B, Lk, Nq)
    v_p = qkv[2, :B * Lv, :Nv].reshape(B, Lv, Nv)

    # 2) head-batched attention; output already in merged (B, Lq, H*Dv) layout
    scale = 1.0 / math.sqrt(d_k)          # temperature = sqrt(d_k)
    attn_out, attn4 = pallas_attention(q_p, k_p, v_p, scale=scale,
                                       n_head=n_head, d_k=d_k, d_v=d_v)
    # TODO(synk): nn.Dropout on attn and on fc output are treated as identity (inference).

    merged = attn_out.reshape(B * Lq, n_head * d_v)       # reshape only, no transpose

    # 3) fc + residual + LayerNorm fused (single launch)
    out = pallas_fc_add_layernorm(merged, params['w_fc'], params['b_fc'],
                                  residual.reshape(B * Lq, Dm),
                                  params['ln_gamma'], params['ln_beta'])
    return out.reshape(B, Lq, Dm), attn4.reshape(n_head * B, Lq, Lk)


# ----------------------------- pure-JAX reference (same bf16 rounding points) -----------------------------

def reference_forward(q, k, v, params):
    n_head, d_k, d_v = params['n_head'], params['d_k'], params['d_v']
    B, Lq, Dm = q.shape
    Lk = k.shape[1]
    bf = lambda t: t.astype(jnp.bfloat16)

    def lin(x2d, w, b):   # kernel: bf16 matmul, f32 accumulate, +bias, emitted as bf16
        acc = jnp.dot(bf(x2d), bf(w), preferred_element_type=jnp.float32)
        return bf(acc + b)

    qp = lin(q.reshape(-1, Dm), params['w_qs'], params['b_qs']).reshape(B, Lq, n_head, d_k)
    kp = lin(k.reshape(-1, Dm), params['w_ks'], params['b_ks']).reshape(B, Lk, n_head, d_k)
    vp = lin(v.reshape(-1, Dm), params['w_vs'], params['b_vs']).reshape(B, Lk, n_head, d_v)

    s = jnp.einsum('bqhd,bkhd->hbqk', qp, kp,
                   preferred_element_type=jnp.float32) * (1.0 / math.sqrt(d_k))
    s = s - jnp.max(s, axis=-1, keepdims=True)
    e = jnp.exp(s)
    attn = e / jnp.sum(e, axis=-1, keepdims=True)                # (H, B, Lq, Lk)
    o = jnp.einsum('hbqk,bkhd->bqhd', bf(attn), vp,
                   preferred_element_type=jnp.float32)            # (B, Lq, H, Dv)
    merged = bf(o.reshape(B * Lq, n_head * d_v))

    fc = jnp.dot(merged, bf(params['w_fc']), preferred_element_type=jnp.float32) + params['b_fc']
    y = fc + q.reshape(B * Lq, Dm)
    mu = jnp.mean(y, axis=-1, keepdims=True)
    var = jnp.mean((y - mu) ** 2, axis=-1, keepdims=True)
    out = (y - mu) / jnp.sqrt(var + 1e-5) * params['ln_gamma'] + params['ln_beta']
    return out.reshape(B, Lq, Dm), attn.reshape(n_head * B, Lq, Lk)


# ----------------------------- main -----------------------------

if __name__ == "__main__":
    n_head, d_model, d_k, d_v = 4, 32, 8, 8
    B, L = 2, 8

    key = jax.random.PRNGKey(0)
    kq, kk, kv, kp = jax.random.split(key, 4)
    q = jax.random.normal(kq, (B, L, d_model), jnp.float32)
    k = jax.random.normal(kk, (B, L, d_model), jnp.float32)
    v = jax.random.normal(kv, (B, L, d_model), jnp.float32)
    params = build_params(kp, n_head, d_model, d_k, d_v)

    out, attn = multi_head_attention_forward(q, k, v, params)
    out = jax.block_until_ready(out)
    attn = jax.block_until_ready(attn)

    assert out.shape == (B, L, d_model), out.shape
    assert attn.shape == (n_head * B, L, L), attn.shape
    assert bool(jnp.all(jnp.isfinite(out))) and bool(jnp.all(jnp.isfinite(attn)))
    # softmax rows sum to ~1 (approx-reciprocal normalization)
    assert float(jnp.max(jnp.abs(jnp.sum(attn, axis=-1) - 1.0))) < 1e-2

    ref_out, ref_attn = reference_forward(q, k, v, params)
    err_out = float(jnp.max(jnp.abs(out - ref_out)))
    err_attn = float(jnp.max(jnp.abs(attn - ref_attn)))
    assert err_out < 1e-2, err_out
    assert err_attn < 1e-2, err_attn

    print("KERNEL_OK")
</pallas_src>

<mosaic_0001>
module attributes {stable_mosaic.version = 11 : i64} {
  func.func @_qkv_proj_kernel(%arg0: i32, %arg1: i32, %arg2: i32, %arg3: i32, %arg4: memref<1x16x32xbf16, #tpu.memory_space<vmem>>, %arg5: memref<1x32x32xbf16, #tpu.memory_space<vmem>>, %arg6: memref<1x1x32xf32, #tpu.memory_space<vmem>>, %arg7: memref<1x16x32xbf16, #tpu.memory_space<vmem>>, %arg8: memref<16x32xf32, #tpu.memory_space<vmem>>) attributes {dimension_semantics = [#tpu.dimension_semantics<parallel>, #tpu.dimension_semantics<parallel>, #tpu.dimension_semantics<parallel>, #tpu.dimension_semantics<arbitrary>], iteration_bounds = array<i64: 3, 1, 1, 1>, scalar_prefetch = 0 : i64, scratch_operands = 1 : i64, tpu.core_type = #tpu.core_type<tc>, window_params = [{transform_indices = @transform_0, window_bounds = array<i64: 1, 16, 32>}, {transform_indices = @transform_1, window_bounds = array<i64: 1, 32, 32>}, {transform_indices = @transform_2, window_bounds = array<i64: 1, 1, 32>}, {transform_indices = @transform_3, window_bounds = array<i64: 1, 16, 32>}]} {
    %c0_i32 = arith.constant 0 : i32
    %0 = arith.cmpi eq, %arg3, %c0_i32 : i32
    %1 = arith.extui %0 : i1 to i32
    %c0_i32_0 = arith.constant 0 : i32
    %2 = arith.cmpi ne, %1, %c0_i32_0 : i32
    scf.if %2 {
      %cst_12 = arith.constant 0.000000e+00 : f32
      %14 = vector.broadcast %cst_12 : f32 to vector<16x32xf32>
      %c0_13 = arith.constant 0 : index
      %c0_14 = arith.constant 0 : index
      %15 = vector.load %arg8[%c0_13, %c0_14] : memref<16x32xf32, #tpu.memory_space<vmem>>, vector<16x32xf32>
      tpu.vector_store %arg8[%c0_13, %c0_14], %14 {strides = array<i32>} : memref<16x32xf32, #tpu.memory_space<vmem>>, vector<16x32xf32>,
    } else {
    }
    %c0 = arith.constant 0 : index
    %c0_1 = arith.constant 0 : index
    %3 = vector.load %arg8[%c0, %c0_1] : memref<16x32xf32, #tpu.memory_space<vmem>>, vector<16x32xf32>
    %c0_2 = arith.constant 0 : index
    %c0_3 = arith.constant 0 : index
    %c0_4 = arith.constant 0 : index
    %4 = vector.load %arg4[%c0_2, %c0_3, %c0_4] : memref<1x16x32xbf16, #tpu.memory_space<vmem>>, vector<1x16x32xbf16>
    %5 = vector.shape_cast %4 : vector<1x16x32xbf16> to vector<16x32xbf16>
    %c0_5 = arith.constant 0 : index
    %c0_6 = arith.constant 0 : index
    %c0_7 = arith.constant 0 : index
    %6 = vector.load %arg5[%c0_5, %c0_6, %c0_7] : memref<1x32x32xbf16, #tpu.memory_space<vmem>>, vector<1x32x32xbf16>
    %7 = vector.shape_cast %6 : vector<1x32x32xbf16> to vector<32x32xbf16>
    %cst = arith.constant dense<0.000000e+00> : vector<16x32xf32>
    %8 = tpu.matmul %5, %7, %cst {dimension_numbers = #tpu.dot_dimension_numbers<[1], [0], [0], [1], [0, 0, 1, 1], [], []>} : vector<16x32xbf16>, vector<32x32xbf16>, vector<16x32xf32> -> vector<16x32xf32>
    %9 = arith.addf %3, %8 : vector<16x32xf32>
    %c0_8 = arith.constant 0 : index
    %c0_9 = arith.constant 0 : index
    %10 = vector.load %arg8[%c0_8, %c0_9] : memref<16x32xf32, #tpu.memory_space<vmem>>, vector<16x32xf32>
    tpu.vector_store %arg8[%c0_8, %c0_9], %9 {strides = array<i32>} : memref<16x32xf32, #tpu.memory_space<vmem>>, vector<16x32xf32>,
    %c0_i32_10 = arith.constant 0 : i32
    %11 = arith.cmpi eq, %arg3, %c0_i32_10 : i32
    %12 = arith.extui %11 : i1 to i32
    %c0_i32_11 = arith.constant 0 : i32
    %13 = arith.cmpi ne, %12, %c0_i32_11 : i32
    scf.if %13 {
      %c0_12 = arith.constant 0 : index
      %c0_13 = arith.constant 0 : index
      %14 = vector.load %arg8[%c0_12, %c0_13] : memref<16x32xf32, #tpu.memory_space<vmem>>, vector<16x32xf32>
      %c0_14 = arith.constant 0 : index
      %c0_15 = arith.constant 0 : index
      %c0_16 = arith.constant 0 : index
      %15 = vector.load %arg6[%c0_14, %c0_15, %c0_16] : memref<1x1x32xf32, #tpu.memory_space<vmem>>, vector<1x1x32xf32>
      %16 = vector.shape_cast %15 : vector<1x1x32xf32> to vector<1x32xf32>
      %17 = vector.broadcast %16 : vector<1x32xf32> to vector<16x32xf32>
      %18 = arith.addf %14, %17 : vector<16x32xf32>
      %19 = arith.truncf %18 : vector<16x32xf32> to vector<16x32xbf16>
      %c0_17 = arith.constant 0 : index
      %c0_18 = arith.constant 0 : index
      %c0_19 = arith.constant 0 : index
      %20 = vector.load %arg7[%c0_17, %c0_18, %c0_19] : memref<1x16x32xbf16, #tpu.memory_space<vmem>>, vector<1x16x32xbf16>
      %21 = vector.shape_cast %20 : vector<1x16x32xbf16> to vector<16x32xbf16>
      %22 = vector.shape_cast %19 : vector<16x32xbf16> to vector<1x16x32xbf16>
      tpu.vector_store %arg7[%c0_17, %c0_18, %c0_19], %22 {strides = array<i32>} : memref<1x16x32xbf16, #tpu.memory_space<vmem>>, vector<1x16x32xbf16>,
    } else {
    }
    return
  }
  func.func @transform_0(%arg0: i32, %arg1: i32, %arg2: i32, %arg3: i32) -> (i32, i32, i32) {
    %c0_i32 = arith.constant 0 : i32
    return %arg0, %arg1, %arg3 : i32, i32, i32
  }
  func.func @transform_1(%arg0: i32, %arg1: i32, %arg2: i32, %arg3: i32) -> (i32, i32, i32) {
    %c0_i32 = arith.constant 0 : i32
    return %arg0, %arg3, %arg2 : i32, i32, i32
  }
  func.func @transform_2(%arg0: i32, %arg1: i32, %arg2: i32, %arg3: i32) -> (i32, i32, i32) {
    %c0_i32 = arith.constant 0 : i32
    %c0_i32_0 = arith.constant 0 : i32
    return %arg0, %c0_i32, %arg2 : i32, i32, i32
  }
  func.func @transform_3(%arg0: i32, %arg1: i32, %arg2: i32, %arg3: i32) -> (i32, i32, i32) {
    %c0_i32 = arith.constant 0 : i32
    return %arg0, %arg1, %arg2 : i32, i32, i32
  }
}

</mosaic_0001>

<bundles_post_ra>
// kernel: tpu_custom_call.1
= control target key start
LH: loop header
LB: loop body
LE: loop exit
PB: predicated region body
PF: predicated region fallthrough
CT: control target
= control target key end

     0   :  { %8 = vsyncpa [#allocation4], 0  ;;  %s1097_s0 = inlined_call_operand.hbm [shape: bf16[3,16,32], index: 0, kind: input, shape index: {}]   ;;  %s1098_s1 = inlined_call_operand.hbm [shape: bf16[3,32,32], index: 1, kind: input, shape index: {}]   ;;  %s1099_s2 = inlined_call_operand.vmem [shape: f32[3,1,32], index: 2, kind: input, shape index: {}]   ;;  %s1100_s3 = inlined_call_operand.hbm [shape: bf16[3,16,32], index: 3, kind: output, shape index: {}]  }
   0x1   :  { %10 = vsyncpa [#allocation4 + $0x1], 0 }
   0x2   :  { %11 = vsyncpa [#allocation7], 0 }
   0x3   :  { %13 = vsyncpa [#allocation7 + $0x1], 0 }
   0x4   :  { %14 = vsyncpa [#allocation5], 0 }
   0x5   :  { %16 = vsyncpa [#allocation5 + $0x1], 0  ;;  %s854_s12 = smov 0   ;;  %s856_s13 = smov 0  }
   0x6   :  { %s858_s14 = smov 0   ;;  %s860_s15 = smov 0  }
   0x7   :  { %s862_s16 = smov 0   ;;  %s864_s17 = smov 0  }
   0x8 LB: > { %s559_s18 = sadd.s32 4294967295, %s823_s17   ;;  %s560_s19 = sadd.s32 4294967294, %s823_s17   ;;  %s823_s17 = sphi %s864_s17, %s22_s17   ;;  %s819_s16 = sphi %s862_s16, %s1117_s16   ;;  %s815_s15 = sphi %s860_s15, %s1116_s15   ;;  %s811_s14 = sphi %s858_s14, %s1115_s14   ;;  %s807_s13 = sphi %s856_s13, %s1114_s13   ;;  %s803_s12 = sphi %s854_s12, %s1113_s12  }
   0x9   : > { %s48_s20 = sadd.s32 1, %s819_s16  ;;  %s59_s21 = sadd.s32 1, %s811_s14 }
   0xa   : > { %p50_p0 = scmp.ge.s32.totalorder %s48_s20, 3  ;;  %p66_p1 = scmp.ne.s32.totalorder %s811_s14, %s807_s13 }
   0xb   : > { %p67_p2 = scmp.eq.s32.totalorder %s823_s17, 0  ;;  %p72_p3 = scmp.ne.s32.totalorder %s807_s13, %s803_s12 }
   0xc   : > { %s1119_s20 = smov (%p50_p0, %s48_s20), 0  ;;  %p73_p5 = scmp.eq.s32.totalorder %s559_s18, 0 }
   0xd   : > { %p895_p4 = por %p67_p2, %p66_p1  ;;  %s52_s23 = ssub.s32 %s819_s16, %s1119_s20 }
   0xe   : > { %p158_p6 = scmp.eq.s32.totalorder %s559_s18, 2  ;;  %p57_p7 = scmp.eq.s32.totalorder %s52_s23, 0 }
   0xf   : > { %p901_p8 = por %p73_p5, %p72_p3  ;;  %p164_p10 = scmp.eq.s32.totalorder %s560_s19, 2 }
  0x10   : > { %p905_p9 = por %p158_p6, %p66_p1  ;;  %p618_p12 = scmp.lt.s32.totalorder %s823_s17, 3 }
  0x11   : > { %s1104_s24 = scalar_select %p901_p8, 1, 0 }
  0x12   : > { %s1105_s25 = scalar_select %p905_p9, 1, 0 }
  0x13   : > { %s910_s26 = scalar_select %p57_p7, %s811_s14, %s59_s21  }
  0x14   : > { %p912_p11 = por %p164_p10, %p72_p3  ;;  %s918_s28 = sand.u32 1, %s811_s14  }
  0x15   : > { %s563_s29 = sshll.u32 %s918_s28, 3  ;;  %s585_s30 = sshll.u32 %s819_s16, 7 }
  0x16   : > { %s1106_s27 = scalar_select %p912_p11, 1, 0 }
  0x17   : > { %s925_s6 = scalar_lea.hbm %s1097_s0, %s585_s30  ;;  %s188_s7 = scalar_lea.vmem [#allocation3], %s563_s29 }
  0x18   : > { %s198_s8 = sshll.u32 %s188_s7, 4  ;;  %p931_p13 = pnand %p618_p12, %p895_p4  ;;  %s927_s8 = int_to_ptr.vmem [resolvable:$true] %s198_s8 }
  0x19   : > { %s185_s10 = scalar_lea.sflag [#allocation4], %s918_s28  ;;  %s677_s11 = scalar_lea.hbm %s925_s6, 128 }
  0x1a   : > { %p678_p1 = scmp.ne.s32.totalorder %s925_s6, %s677_s11  ;;  %p679_p2 = pneg %p931_p13 }
  0x1b   : > { %s682_s21 = scalar_lea.hbm %s1097_s0, 384  ;;  %p683_p4 = scmp.lt.u32.totalorder %s925_s6, %s1097_s0 }
  0x1c   : > { %p680_p3 = pnand %p679_p2, %p678_p1  ;;  %p684_p6 = scmp.lt.u32.totalorder %s682_s21, %s677_s11 }
  0x1d   : > { %p686_p10 = scmp.lt.u32.totalorder %s677_s11, %s925_s6 }
  0x1e   : > { %p681_p5 = pneg %p680_p3  ;;  %p685_p7 = por %p684_p6, %p683_p4 }
  0x20   : > { %p687_p12 = por %p686_p10, %p685_p7 }
  0x22   : > { %p688_p0 = pnand %p687_p12, %p681_p5 }
  0x24   : > { %691 = shalt.err (!%p688_p0)
}
  0x25   : > { %s692_s29 = scalar_lea.vmem %s927_s8, 128  ;;  %s825_s30 = smov [#allocation3]  }
  0x26   : > { %p693_p1 = scmp.ne.s32.totalorder %s927_s8, %s692_s29  ;;  %s697_s4 = sshll.u32 %s825_s30, 4  ;;  %s698_s4 = int_to_ptr.vmem [resolvable:$false] %s697_s4 }
  0x27   : > { %s699_s5 = scalar_lea.vmem %s698_s4, 256  ;;  %p700_p9 = scmp.lt.s32.totalorder %s927_s8, %s698_s4 }
  0x28   : > { %p695_p3 = pnand %p693_p1, %p679_p2  ;;  %p701_p4 = scmp.lt.s32.totalorder %s699_s5, %s692_s29 }
  0x2a   : > { %p696_p11 = pneg %p695_p3  ;;  %p702_p6 = por %p701_p4, %p700_p9 }
  0x2c   : > { %p703_p7 = pnand %p702_p6, %p696_p11 }
  0x2e   : > { %706 = shalt.err (!%p703_p7)
}
  0x2f   : > { %s826_s7 = smov 64   ;;  %s827_s11 = smov 4  }
  0x30   : > { %610 = dma.hbm_to_vmem [thread:$0]  (!%p931_p13), %s925_s6, 128, %s927_s8, %s185_s10, %s826_s7, %s826_s7, %s827_s11  }
  0x31   : > { %p239_p9 = scmp.lt.s32.totalorder %s823_s17, 4  ;;  %s566_s18 = sshll.u32 %s918_s28, 4 }
  0x32   : > { %s586_s19 = sshll.u32 %s819_s16, 8  ;;  %p1108_p11 = scmp.ge.s32.totalorder %s823_s17, 1 }
  0x33   : > { %s979_s29 = scalar_lea.hbm %s1098_s1, %s586_s19  ;;  %s212_s30 = scalar_lea.vmem [#allocation6], %s566_s18 }
  0x34   : > { %p972_p0 = pnand %p1108_p11, %p239_p9  ;;  %s222_s4 = sshll.u32 %s212_s30, 4  ;;  %s981_s4 = int_to_ptr.vmem [resolvable:$true] %s222_s4 }
  0x35   : > { %s209_s6 = scalar_lea.sflag [#allocation7], %s918_s28  ;;  %s707_s8 = scalar_lea.hbm %s979_s29, 256 }
  0x36   : > { %p708_p5 = scmp.ne.s32.totalorder %s979_s29, %s707_s8  ;;  %s712_s19 = scalar_lea.hbm %s1098_s1, 768 }
  0x37   : > { %p713_p1 = scmp.lt.u32.totalorder %s979_s29, %s1098_s1  ;;  %p714_p3 = scmp.lt.u32.totalorder %s712_s19, %s707_s8 }
  0x38   : > { %p710_p10 = pnand %p708_p5, %p679_p2  ;;  %p716_p6 = scmp.lt.u32.totalorder %s707_s8, %s979_s29 }
  0x39   : > { %p715_p4 = por %p714_p3, %p713_p1 }
  0x3a   : > { %p711_p12 = pneg %p710_p10 }
  0x3b   : > { %p717_p7 = por %p716_p6, %p715_p4 }
  0x3d   : > { %p718_p9 = pnand %p717_p7, %p711_p12 }
  0x3f   : > { %721 = shalt.err (!%p718_p9)
}
  0x40   : > { %s722_s18 = scalar_lea.vmem %s981_s4, 256  ;;  %s828_s30 = smov [#allocation6]  }
  0x41   : > { %p723_p11 = scmp.ne.s32.totalorder %s981_s4, %s722_s18  ;;  %s727_s10 = sshll.u32 %s828_s30, 4  ;;  %s728_s10 = int_to_ptr.vmem [resolvable:$false] %s727_s10 }
  0x42   : > { %s729_s5 = scalar_lea.vmem %s728_s10, 512  ;;  %p730_p8 = scmp.lt.s32.totalorder %s981_s4, %s728_s10 }
  0x43   : > { %p725_p5 = pnand %p723_p11, %p679_p2  ;;  %p731_p1 = scmp.lt.s32.totalorder %s729_s5, %s722_s18 }
  0x45   : > { %p726_p10 = pneg %p725_p5  ;;  %p732_p3 = por %p731_p1, %p730_p8 }
  0x47   : > { %p733_p4 = pnand %p732_p3, %p726_p10 }
  0x49   : > { %736 = shalt.err (!%p733_p4)
}
  0x4a   : > { %613 = dma.hbm_to_vmem [thread:$0]  (!%p931_p13), %s979_s29, 256, %s981_s4, %s209_s6, %s826_s7, %s826_s7, %s827_s11  }
  0x4b   : > { %243 = sbr.rel (%p972_p0) target bundleno = 338 (0x152), region = 32  ;;  %s1015_s8 = sand.u32 (!%p972_p0), 1, %s807_s13  }
  0x4c   : > { %s570_s19 = sshll.u32 (!%p972_p0), %s1015_s8, 3  ;;  %s246_s9 = scalar_lea.sflag (!%p972_p0), [#allocation4], %s1015_s8 }
  0x4d   : > { %s249_s22 = scalar_lea.vmem (!%p972_p0), [#allocation3], %s570_s19  ;;  %p1110_p8 = scmp.ne.s32.totalorder (!%p972_p0), %s1104_s24, 0 }
  0x52   : > { %790 = dma.done.wait (%p1110_p8), %s246_s9, 128  }
  0x53   : > { %792 = vsyncadd (%p1110_p8), %s246_s9, 4294967168  ;;  %s571_s28 = sshll.u32 %s1015_s8, 4  ;;  %s255_s7 = scalar_lea.sflag [#allocation7], %s1015_s8 }
  0x54   : > { %s258_s11 = scalar_lea.vmem [#allocation6], %s571_s28 }
  0x55   : > { %794 = dma.done.wait (%p1110_p8), %s255_s7, 256  }
  0x56   : > { %796 = vsyncadd (%p1110_p8), %s255_s7, 4294967040  ;;  %vm306_vm0 = vcmask 261120   ;;  %v829_v0 = vmov 0.0   ;;  %vm830_vm1 = vmmov 0   ;;  %v674_v1 = vld [vmem:[%s258_s11] sm:$0xff]   ;;  %v675_v2 = vld [vmem:[%s258_s11 + $0x8] sm:$0xff]  }
  0x57   : > { %593 = vmatprep.subr.bf16.mxu0 %v829_v0  ;;  %597 = vmatprep.mubr.msk.bf16.mxu0 %vm830_vm1, %v829_v0  ;;  %307 = vst.msk [vmem:[#allocation2] sm:$0xff] %vm306_vm0, %v829_v0  ;;  %308 = vst.msk [vmem:[#allocation2 + $0x8] sm:$0xff] %vm306_vm0, %v829_v0  ;;  %v676_v3 = vld [vmem:[%s249_s22] sm:$0xff]   ;;  %p294_p13 = scmp.lt.s32.totalorder %s815_s15, 2  ;;  %s589_s6 = sshll.u32 %s815_s15, 7  ;;  %vm405_vm2 = vcmask 257024  }
  0x58   : > { %594 = vmatpush3.bf16.msra.mxu0 %v674_v1  ;;  %s291_s23 = scalar_lea.vmem [#allocation8], %s570_s19  ;;  %s1047_s5 = scalar_lea.hbm %s1100_s3, %s589_s6 }
  0x59   : > { %595 = vmatprep.subr.bf16.mxu0 %v829_v0  ;;  %s295_s24 = scalar_select %p294_p13, %s815_s15, 2 }
  0x5a   : > { %s425_s18 = sshll.u32 %s291_s23, 4  ;;  %s409_s15 = scalar_lea.sflag [#allocation5], %s1015_s8  ;;  %s1049_s18 = int_to_ptr.vmem [resolvable:$true] %s425_s18 }
  0x5b   : > { %s299_s4 = scalar_lea.vmem %s1099_s2, %s295_s24  ;;  %s737_s19 = scalar_lea.vmem %s1049_s18, 128 }
  0x5c   : > { %596 = vmatpush3.bf16.msra.mxu0 %v675_v2  ;;  %v577_v12 = vld [vmem:[%s299_s4] ss:$0 sm:$0xff]  ;;  %p738_p2 = scmp.ne.s32.totalorder %s1049_s18, %s737_s19  ;;  %p1111_p0 = scmp.ne.s32.totalorder %s1105_s25, 0 }
  0x5d   : > { %s831_s9 = smov [#allocation8]  }
  0x5e   : > { %v309_v4 = vld [vmem:[#allocation2] sm:$0xff]  ;;  %v310_v6 = vld [vmem:[#allocation2 + $0x8] sm:$0xff]  ;;  %p739_p12 = pnand %p738_p2, %p1111_p0  ;;  %s741_s22 = sshll.u32 %s831_s9, 4  ;;  %s742_s22 = int_to_ptr.vmem [resolvable:$false] %s741_s22 }
  0x5f   : > { %598 = vmatmul.mubr.msk.bf16.vlgmr.msra.gmra.mrb[0].mxu0 %vm306_vm0, %v676_v3  ;;  %s743_s28 = scalar_lea.vmem %s742_s22, 256  ;;  %p744_p7 = scmp.lt.s32.totalorder %s1049_s18, %s742_s22 }
  0x60   : > { %p740_p6 = pneg %p739_p12  ;;  %p745_p9 = scmp.lt.s32.totalorder %s743_s28, %s737_s19 }
  0x62   : > { %p746_p11 = por %p745_p9, %p744_p7 }
  0x64   : > { %p747_p5 = pnand %p746_p11, %p740_p6 }
 0x132   : > { %v372_v5 = vpop.f32.mrb[0].mxu0 }
 0x133   : > { %v379_v7 = vadd.f32 %v372_v5, %v309_v4  ;;  %v599_v8 = vpop.f32.mrb[1].mxu0 }
 0x134   : > { %v375_v9 = vpop.f32.mrb[2].mxu0 }
 0x135   : > { %381 = vst.msk [vmem:[#allocation2] sm:$0xff] %vm306_vm0, %v379_v7  ;;  %v380_v10 = vadd.f32 %v375_v9, %v310_v6  ;;  %v600_v11 = vpop.f32.mrb[3].mxu0 }
 0x137   : > { %382 = vst.msk [vmem:[#allocation2 + $0x8] sm:$0xff] %vm306_vm0, %v380_v10 }
 0x13c   : > { %v386_v13 = vld [vmem:[#allocation2] sm:$0xff] }
 0x13d   : > { %v395_v14 = vadd.f32 %v577_v12, %v386_v13 }
 0x13e   : > { %v387_v15 = vld [vmem:[#allocation2 + $0x8] sm:$0xff] }
 0x13f   : > { %v396_v16 = vadd.f32 %v577_v12, %v387_v15  ;;  %v587_v17 = vpack.c.bf16 %v395_v14, %v395_v14 }
 0x141   : > { %v588_v18 = vpack.c.bf16 %v396_v16, %v396_v16  ;;  %406 = vst.msk [vmem:[%s291_s23] sm:$0xf] %vm405_vm2, %v587_v17 }
 0x143   : > { %407 = vst.msk [vmem:[%s291_s23 + $0x4] sm:$0xf] %vm405_vm2, %v588_v18 }
 0x144   : > { %750 = shalt.err (!%p747_p5)
}
 0x145   : > { %s751_s7 = scalar_lea.hbm %s1047_s5, 128  ;;  %s755_s21 = scalar_lea.hbm %s1100_s3, 384 }
 0x146   : > { %p752_p10 = scmp.ne.s32.totalorder %s1047_s5, %s751_s7  ;;  %p756_p4 = scmp.lt.u32.totalorder %s1047_s5, %s1100_s3 }
 0x147   : > { %p757_p8 = scmp.lt.u32.totalorder %s755_s21, %s751_s7  ;;  %p759_p2 = scmp.lt.u32.totalorder %s751_s7, %s1047_s5 }
 0x148   : > { %p753_p1 = pnand %p752_p10, %p1111_p0 }
 0x149   : > { %p758_p13 = por %p757_p8, %p756_p4 }
 0x14a   : > { %p754_p3 = pneg %p753_p1 }
 0x14b   : > { %p760_p12 = por %p759_p2, %p758_p13 }
 0x14d   : > { %p761_p6 = pnand %p760_p12, %p754_p3 }
 0x14f   : > { %764 = shalt.err (!%p761_p6)
}
 0x150   : > { %s832_s6 = smov 64   ;;  %s833_s23 = smov 4  }
 0x151   : > { %605 = dma.vmem_to_hbm [thread:$0]  (%p1111_p0), %s1049_s18, 128, %s1047_s5, %s409_s15, %s832_s6, %s832_s6, %s833_s23  }
 0x152 PF: > { %p619_p7 = scmp.ge.s32.totalorder %s823_s17, 2  ;;  %s440_s30 = sand.u32 1, %s803_s12  }
 0x153   : > { %p1112_p9 = scmp.ne.s32.totalorder %s1106_s27, 0  ;;  %s441_s10 = scalar_lea.sflag [#allocation5], %s440_s30 }
 0x155   : > { %p615_p11 = pnand %p619_p7, %p1112_p9 }
 0x157   : > { %798 = dma.done.wait (!%p615_p11), %s441_s10, 128  }
 0x158   : > { %800 = vsyncadd (!%p615_p11), %s441_s10, 4294967168  ;;  %s22_s17 = sadd.s32 1, %s823_s17   ;;  %s1113_s12 = smov %s807_s13 }
 0x159   : > { %p19_p5 = scmp.ge.s32.totalorder %s22_s17, 5   ;;  %s1114_s13 = smov %s811_s14 }
 0x15a   : > { %s1115_s14 = smov %s910_s26  ;;  %s1116_s15 = smov %s819_s16 }
 0x15b   : > { %s1117_s16 = smov %s1119_s20  ;;  %21 = sbr.rel (!%p19_p5) target bundleno = 8 (0x8), region = 101 }
 0x162   :  { %446 = vsyncpa [#allocation4], 1 }
 0x163   :  { %448 = vsyncpa [#allocation4 + $0x1], 1 }
 0x164   :  { %449 = vsyncpa [#allocation7], 1 }
 0x165   :  { %451 = vsyncpa [#allocation7 + $0x1], 1 }
 0x166   :  { %452 = vsyncpa [#allocation5], 1 }
 0x167   :  { %454 = vsyncpa [#allocation5 + $0x1], 1 }

</bundles_post_ra>
